<compile_context>
chip_gen: v5e
topology: v5e:2x2
jax: 0.10.0
libtpu: 0.0.40
codegen_flags: <defaults>
</compile_context>

<pallas_src>
import jax
import jax.numpy as jnp
from jax.experimental import pallas as pl
from jax.experimental.pallas import tpu as pltpu


def _make_se_kernel(nb: int, hw: int):
    inv_hw = 1.0 / float(hw)

    def kernel(x_ref, w1_ref, b1_ref, w2_ref, b2_ref, o_ref, scale_ref):
        # x_ref / o_ref : (NB, C, HW) block (NB fused batch elements)
        # w1_ref : (Cr, C), b1_ref : (Cr, 1), w2_ref : (C, Cr), b2_ref : (C, 1)
        # scale_ref : VMEM (C, NB) scratch, used first for pooled then for the scale.

        # ---- Pass 1: squeeze (global average pool), one (C, HW) slice at a time.
        # Static unroll keeps every index static (cheap lane-column stores) and
        # avoids loading the whole multi-MiB block into vregs at once.
        for i in range(nb):
            x_el = x_ref[i].astype(jnp.float32)                       # (C, HW)
            scale_ref[:, i:i + 1] = (
                jnp.sum(x_el, axis=1, keepdims=True) * inv_hw          # (C, 1)
            )

        # ---- Pass 2: excitation, batched over the NB fused elements (lane axis).
        pooled = scale_ref[...]                                        # (C, NB)
        h = jnp.dot(w1_ref[...], pooled,
                    preferred_element_type=jnp.float32) + b1_ref[...]  # (Cr, NB)
        h = jnp.maximum(h, 0.0)                                        # ReLU
        s = jnp.dot(w2_ref[...], h,
                    preferred_element_type=jnp.float32) + b2_ref[...]  # (C, NB)
        s = jax.nn.sigmoid(s)
        scale_ref[...] = s                                             # reuse scratch

        # ---- Pass 3: scale and store, one element at a time (lane-dense stores).
        for i in range(nb):
            x_el = x_ref[i].astype(jnp.float32)                        # (C, HW)
            s_el = scale_ref[:, i:i + 1]                               # (C, 1)
            o_ref[i] = (x_el * s_el).astype(o_ref.dtype)

    return kernel


def _pick_block_batch(n: int, per_elem_bytes: int,
                      target_block_bytes: int = 2 << 20,
                      min_split_bytes: int = 256 << 10,
                      max_nb: int = 32) -> int:
    """How many batch elements to fuse per grid step."""
    nb = max(1, min(n, max_nb, target_block_bytes // max(1, per_elem_bytes)))
    # Prefer >= 2 grid steps (v7x has 2 TensorCores sharding the "parallel" axis),
    # but only if each half still forms a reasonably sized block.
    if nb >= n and n > 1 and pl.cdiv(n, 2) * per_elem_bytes >= min_split_bytes:
        nb = pl.cdiv(n, 2)
    return int(nb)


def se_block(x, w1, b1, w2, b2, *, block_batch=None):
    """SEBlock forward.

    x: (N, C, H, W); w1: (Cr, C); b1: (Cr, 1); w2: (C, Cr); b2: (C, 1).
    """
    N, C, H, W = x.shape
    Cr = w1.shape[0]
    HW = H * W
    x_flat = x.reshape(N, C, HW)

    per_elem_bytes = C * HW * jnp.dtype(x.dtype).itemsize
    nb = block_batch if block_batch is not None else _pick_block_batch(N, per_elem_bytes)

    # Pad the batch so it divides evenly into NB-element blocks (padded rows are
    # zeros; their outputs are discarded below).
    n_pad = pl.cdiv(N, nb) * nb
    if n_pad != N:
        x_flat = jnp.pad(x_flat, ((0, n_pad - N), (0, 0), (0, 0)))

    grid = (n_pad // nb,)
    kernel = _make_se_kernel(nb, HW)

    out_flat = pl.pallas_call(
        kernel,
        out_shape=jax.ShapeDtypeStruct((n_pad, C, HW), x.dtype),
        grid=grid,
        in_specs=[
            pl.BlockSpec((nb, C, HW), lambda i: (i, 0, 0)),   # x (NB elements / step)
            pl.BlockSpec((Cr, C), lambda i: (0, 0)),          # w1 (resident)
            pl.BlockSpec((Cr, 1), lambda i: (0, 0)),          # b1
            pl.BlockSpec((C, Cr), lambda i: (0, 0)),          # w2
            pl.BlockSpec((C, 1), lambda i: (0, 0)),           # b2
        ],
        out_specs=pl.BlockSpec((nb, C, HW), lambda i: (i, 0, 0)),
        scratch_shapes=[pltpu.VMEM((C, nb), jnp.float32)],     # pooled / scale scratch
        compiler_params=pltpu.CompilerParams(
            dimension_semantics=("parallel",),
            # Blocks are capped at ~2 MiB; 4x (in+out double buffering) + weights
            # stays well under this on every generation (v7x physical = 64 MiB).
            vmem_limit_bytes=48 * 1024 * 1024,
        ),
    )(x_flat, w1, b1, w2, b2)

    return out_flat[:N].reshape(N, C, H, W)


def _reference(x, w1, b1, w2, b2):
    # Pure-JAX reference for correctness checking.
    pooled = jnp.mean(x, axis=(2, 3))                       # (N, C)
    h = jnp.maximum(pooled @ w1.T + b1[:, 0], 0.0)          # (N, Cr)
    s = jax.nn.sigmoid(h @ w2.T + b2[:, 0])                 # (N, C)
    return x * s[:, :, None, None]


if __name__ == "__main__":
    # Small, module-consistent shapes: ch=32, r=4 -> hidden = ch//r = 8
    N, C, H, W = 2, 32, 16, 16
    R = 4
    Cr = C // R

    key = jax.random.PRNGKey(0)
    kx, k1, k2, k3, k4 = jax.random.split(key, 5)

    x = jax.random.normal(kx, (N, C, H, W), dtype=jnp.float32)

    # 1x1 conv weights are (out, in, 1, 1) in PyTorch -> stored here as (out, in).
    w1 = jax.random.normal(k1, (Cr, C), dtype=jnp.float32) * (1.0 / jnp.sqrt(C))
    b1 = (jax.random.normal(k2, (Cr,), dtype=jnp.float32) * 0.01).reshape(Cr, 1)
    w2 = jax.random.normal(k3, (C, Cr), dtype=jnp.float32) * (1.0 / jnp.sqrt(Cr))
    b2 = (jax.random.normal(k4, (C,), dtype=jnp.float32) * 0.01).reshape(C, 1)

    out = se_block(x, w1, b1, w2, b2)
    out = jax.block_until_ready(out)

    ref = _reference(x, w1, b1, w2, b2)
    assert out.shape == (N, C, H, W)
    assert jnp.allclose(out, ref, atol=1e-5, rtol=1e-5), "mismatch vs reference"

    print("KERNEL_OK")
</pallas_src>

<mosaic_0001>
module attributes {stable_mosaic.version = 11 : i64} {
  func.func @kernel(%arg0: i32, %arg1: memref<2x32x256xf32, #tpu.memory_space<vmem>>, %arg2: memref<8x32xf32, #tpu.memory_space<vmem>>, %arg3: memref<8x1xf32, #tpu.memory_space<vmem>>, %arg4: memref<32x8xf32, #tpu.memory_space<vmem>>, %arg5: memref<32x1xf32, #tpu.memory_space<vmem>>, %arg6: memref<2x32x256xf32, #tpu.memory_space<vmem>>, %arg7: memref<32x2xf32, #tpu.memory_space<vmem>>) attributes {dimension_semantics = [#tpu.dimension_semantics<parallel>], iteration_bounds = array<i64: 1>, scalar_prefetch = 0 : i64, scratch_operands = 1 : i64, tpu.core_type = #tpu.core_type<tc>, window_params = [{transform_indices = @transform_0, window_bounds = array<i64: 2, 32, 256>}, {pipeline_mode = #tpu.pipeline_mode<synchronous>, transform_indices = @transform_1, window_bounds = array<i64: 8, 32>}, {pipeline_mode = #tpu.pipeline_mode<synchronous>, transform_indices = @transform_2, window_bounds = array<i64: 8, 1>}, {pipeline_mode = #tpu.pipeline_mode<synchronous>, transform_indices = @transform_3, window_bounds = array<i64: 32, 8>}, {pipeline_mode = #tpu.pipeline_mode<synchronous>, transform_indices = @transform_4, window_bounds = array<i64: 32, 1>}, {transform_indices = @transform_5, window_bounds = array<i64: 2, 32, 256>}]} {
    %c0 = arith.constant 0 : index
    %c0_0 = arith.constant 0 : index
    %c0_1 = arith.constant 0 : index
    %0 = vector.load %arg1[%c0, %c0_0, %c0_1] : memref<2x32x256xf32, #tpu.memory_space<vmem>>, vector<1x32x256xf32>
    %1 = vector.shape_cast %0 : vector<1x32x256xf32> to vector<32x256xf32>
    %cst = arith.constant dense<0.000000e+00> : vector<32xf32>
    %2 = vector.multi_reduction <add>, %1, %cst [1] : vector<32x256xf32> to vector<32xf32>
    %3 = vector.shape_cast %2 : vector<32xf32> to vector<32x1xf32>
    %cst_2 = arith.constant 3.906250e-03 : f32
    %4 = vector.broadcast %cst_2 : f32 to vector<32x1xf32>
    %5 = arith.mulf %3, %4 : vector<32x1xf32>
    %c0_3 = arith.constant 0 : index
    %c0_4 = arith.constant 0 : index
    %6 = vector.load %arg7[%c0_3, %c0_4] : memref<32x2xf32, #tpu.memory_space<vmem>>, vector<32x1xf32>
    tpu.vector_store %arg7[%c0_3, %c0_4], %5 {strides = array<i32>} : memref<32x2xf32, #tpu.memory_space<vmem>>, vector<32x1xf32>,
    %c1 = arith.constant 1 : index
    %c0_5 = arith.constant 0 : index
    %c0_6 = arith.constant 0 : index
    %7 = vector.load %arg1[%c1, %c0_5, %c0_6] : memref<2x32x256xf32, #tpu.memory_space<vmem>>, vector<1x32x256xf32>
    %8 = vector.shape_cast %7 : vector<1x32x256xf32> to vector<32x256xf32>
    %cst_7 = arith.constant dense<0.000000e+00> : vector<32xf32>
    %9 = vector.multi_reduction <add>, %8, %cst_7 [1] : vector<32x256xf32> to vector<32xf32>
    %10 = vector.shape_cast %9 : vector<32xf32> to vector<32x1xf32>
    %cst_8 = arith.constant 3.906250e-03 : f32
    %11 = vector.broadcast %cst_8 : f32 to vector<32x1xf32>
    %12 = arith.mulf %10, %11 : vector<32x1xf32>
    %c0_9 = arith.constant 0 : index
    %c1_10 = arith.constant 1 : index
    %13 = vector.load %arg7[%c0_9, %c1_10] : memref<32x2xf32, #tpu.memory_space<vmem>>, vector<32x1xf32>
    tpu.vector_store %arg7[%c0_9, %c1_10], %12 {strides = array<i32>} : memref<32x2xf32, #tpu.memory_space<vmem>>, vector<32x1xf32>,
    %c0_11 = arith.constant 0 : index
    %c0_12 = arith.constant 0 : index
    %14 = vector.load %arg7[%c0_11, %c0_12] : memref<32x2xf32, #tpu.memory_space<vmem>>, vector<32x2xf32>
    %c0_13 = arith.constant 0 : index
    %c0_14 = arith.constant 0 : index
    %15 = vector.load %arg2[%c0_13, %c0_14] : memref<8x32xf32, #tpu.memory_space<vmem>>, vector<8x32xf32>
    %cst_15 = arith.constant dense<0.000000e+00> : vector<8x2xf32>
    %16 = tpu.matmul %15, %14, %cst_15 {dimension_numbers = #tpu.dot_dimension_numbers<[1], [0], [0], [1], [0, 0, 1, 1], [], []>} : vector<8x32xf32>, vector<32x2xf32>, vector<8x2xf32> -> vector<8x2xf32>
    %c0_16 = arith.constant 0 : index
    %c0_17 = arith.constant 0 : index
    %17 = vector.load %arg3[%c0_16, %c0_17] : memref<8x1xf32, #tpu.memory_space<vmem>>, vector<8x1xf32>
    %18 = vector.broadcast %17 : vector<8x1xf32> to vector<8x2xf32>
    %19 = arith.addf %16, %18 : vector<8x2xf32>
    %cst_18 = arith.constant 0.000000e+00 : f32
    %20 = vector.broadcast %cst_18 : f32 to vector<8x2xf32>
    %21 = arith.maximumf %19, %20 : vector<8x2xf32>
    %c0_19 = arith.constant 0 : index
    %c0_20 = arith.constant 0 : index
    %22 = vector.load %arg4[%c0_19, %c0_20] : memref<32x8xf32, #tpu.memory_space<vmem>>, vector<32x8xf32>
    %cst_21 = arith.constant dense<0.000000e+00> : vector<32x2xf32>
    %23 = tpu.matmul %22, %21, %cst_21 {dimension_numbers = #tpu.dot_dimension_numbers<[1], [0], [0], [1], [0, 0, 1, 1], [], []>} : vector<32x8xf32>, vector<8x2xf32>, vector<32x2xf32> -> vector<32x2xf32>
    %c0_22 = arith.constant 0 : index
    %c0_23 = arith.constant 0 : index
    %24 = vector.load %arg5[%c0_22, %c0_23] : memref<32x1xf32, #tpu.memory_space<vmem>>, vector<32x1xf32>
    %25 = vector.broadcast %24 : vector<32x1xf32> to vector<32x2xf32>
    %26 = arith.addf %23, %25 : vector<32x2xf32>
    %27 = arith.negf %26 : vector<32x2xf32>
    %28 = math.exp %27 : vector<32x2xf32>
    %cst_24 = arith.constant 1.000000e+00 : f32
    %29 = vector.broadcast %cst_24 : f32 to vector<32x2xf32>
    %30 = arith.addf %29, %28 : vector<32x2xf32>
    %31 = arith.divf %29, %30 : vector<32x2xf32>
    %c0_25 = arith.constant 0 : index
    %c0_26 = arith.constant 0 : index
    %32 = vector.load %arg7[%c0_25, %c0_26] : memref<32x2xf32, #tpu.memory_space<vmem>>, vector<32x2xf32>
    tpu.vector_store %arg7[%c0_25, %c0_26], %31 {strides = array<i32>} : memref<32x2xf32, #tpu.memory_space<vmem>>, vector<32x2xf32>,
    %c0_27 = arith.constant 0 : index
    %c0_28 = arith.constant 0 : index
    %c0_29 = arith.constant 0 : index
    %33 = vector.load %arg1[%c0_27, %c0_28, %c0_29] : memref<2x32x256xf32, #tpu.memory_space<vmem>>, vector<1x32x256xf32>
    %34 = vector.shape_cast %33 : vector<1x32x256xf32> to vector<32x256xf32>
    %c0_30 = arith.constant 0 : index
    %c0_31 = arith.constant 0 : index
    %35 = vector.load %arg7[%c0_30, %c0_31] : memref<32x2xf32, #tpu.memory_space<vmem>>, vector<32x1xf32>
    %36 = vector.broadcast %35 : vector<32x1xf32> to vector<32x256xf32>
    %37 = arith.mulf %34, %36 : vector<32x256xf32>
    %c0_32 = arith.constant 0 : index
    %c0_33 = arith.constant 0 : index
    %c0_34 = arith.constant 0 : index
    %38 = vector.load %arg6[%c0_32, %c0_33, %c0_34] : memref<2x32x256xf32, #tpu.memory_space<vmem>>, vector<1x32x256xf32>
    %39 = vector.shape_cast %38 : vector<1x32x256xf32> to vector<32x256xf32>
    %40 = vector.shape_cast %37 : vector<32x256xf32> to vector<1x32x256xf32>
    tpu.vector_store %arg6[%c0_32, %c0_33, %c0_34], %40 {strides = array<i32>} : memref<2x32x256xf32, #tpu.memory_space<vmem>>, vector<1x32x256xf32>,
    %c1_35 = arith.constant 1 : index
    %c0_36 = arith.constant 0 : index
    %c0_37 = arith.constant 0 : index
    %41 = vector.load %arg1[%c1_35, %c0_36, %c0_37] : memref<2x32x256xf32, #tpu.memory_space<vmem>>, vector<1x32x256xf32>
    %42 = vector.shape_cast %41 : vector<1x32x256xf32> to vector<32x256xf32>
    %c0_38 = arith.constant 0 : index
    %c1_39 = arith.constant 1 : index
    %43 = vector.load %arg7[%c0_38, %c1_39] : memref<32x2xf32, #tpu.memory_space<vmem>>, vector<32x1xf32>
    %44 = vector.broadcast %43 : vector<32x1xf32> to vector<32x256xf32>
    %45 = arith.mulf %42, %44 : vector<32x256xf32>
    %c1_40 = arith.constant 1 : index
    %c0_41 = arith.constant 0 : index
    %c0_42 = arith.constant 0 : index
    %46 = vector.load %arg6[%c1_40, %c0_41, %c0_42] : memref<2x32x256xf32, #tpu.memory_space<vmem>>, vector<1x32x256xf32>
    %47 = vector.shape_cast %46 : vector<1x32x256xf32> to vector<32x256xf32>
    %48 = vector.shape_cast %45 : vector<32x256xf32> to vector<1x32x256xf32>
    tpu.vector_store %arg6[%c1_40, %c0_41, %c0_42], %48 {strides = array<i32>} : memref<2x32x256xf32, #tpu.memory_space<vmem>>, vector<1x32x256xf32>,
    return
  }
  func.func @transform_0(%arg0: i32) -> (i32, i32, i32) {
    %c0_i32 = arith.constant 0 : i32
    %c0_i32_0 = arith.constant 0 : i32
    %c0_i32_1 = arith.constant 0 : i32
    return %arg0, %c0_i32, %c0_i32_0 : i32, i32, i32
  }
  func.func @transform_1(%arg0: i32) -> (i32, i32) {
    %c0_i32 = arith.constant 0 : i32
    %c0_i32_0 = arith.constant 0 : i32
    %c0_i32_1 = arith.constant 0 : i32
    return %c0_i32, %c0_i32_0 : i32, i32
  }
  func.func @transform_2(%arg0: i32) -> (i32, i32) {
    %c0_i32 = arith.constant 0 : i32
    %c0_i32_0 = arith.constant 0 : i32
    %c0_i32_1 = arith.constant 0 : i32
    return %c0_i32, %c0_i32_0 : i32, i32
  }
  func.func @transform_3(%arg0: i32) -> (i32, i32) {
    %c0_i32 = arith.constant 0 : i32
    %c0_i32_0 = arith.constant 0 : i32
    %c0_i32_1 = arith.constant 0 : i32
    return %c0_i32, %c0_i32_0 : i32, i32
  }
  func.func @transform_4(%arg0: i32) -> (i32, i32) {
    %c0_i32 = arith.constant 0 : i32
    %c0_i32_0 = arith.constant 0 : i32
    %c0_i32_1 = arith.constant 0 : i32
    return %c0_i32, %c0_i32_0 : i32, i32
  }
  func.func @transform_5(%arg0: i32) -> (i32, i32, i32) {
    %c0_i32 = arith.constant 0 : i32
    %c0_i32_0 = arith.constant 0 : i32
    %c0_i32_1 = arith.constant 0 : i32
    return %arg0, %c0_i32, %c0_i32_0 : i32, i32, i32
  }
}

</mosaic_0001>

<bundles_post_ra>
// kernel: tpu_custom_call.1
= control target key start
LH: loop header
LB: loop body
LE: loop exit
PB: predicated region body
PF: predicated region fallthrough
CT: control target
= control target key end

     0   :  { %10 = vsyncpa [#allocation4], 0  ;;  %s654_s0 = inlined_call_operand.hbm [shape: f32[2,32,256], index: 0, kind: input, shape index: {}]   ;;  %s655_s1 = inlined_call_operand.vmem [shape: f32[8,32], index: 1, kind: input, shape index: {}]   ;;  %s656_s2 = inlined_call_operand.vmem [shape: f32[8,1], index: 2, kind: input, shape index: {}]   ;;  %s657_s3 = inlined_call_operand.vmem [shape: f32[32,8], index: 3, kind: input, shape index: {}]   ;;  %s658_s4 = inlined_call_operand.vmem [shape: f32[32,1], index: 4, kind: input, shape index: {}]   ;;  %s659_s5 = inlined_call_operand.hbm [shape: f32[2,32,256], index: 5, kind: output, shape index: {}]  }
   0x1   :  { %11 = vsyncpa [#allocation5], 0  ;;  %s16_s20 = sshll.u32 %s654_s0, 4  ;;  %s492_s21 = smov [#allocation3]   ;;  %s17_s20 = int_to_ptr.hbm [resolvable:$true] %s16_s20 }
   0x2   :  { %s18_s22 = sshll.u32 %s492_s21, 4  ;;  %s493_s23 = smov 256   ;;  %s19_s22 = int_to_ptr.vmem [resolvable:$true] %s18_s22 }
   0x3   :  { %s494_s24 = smov 16  }
   0x4   :  { %24 = dma.hbm_to_vmem [thread:$0]  %s17_s20, 2048, %s19_s22, [#allocation4], %s493_s23, %s493_s23, %s494_s24  }
   0x5   :  { %488 = dma.done.wait [#allocation4], 2048  }
   0x6   :  { %489 = vsyncadd [#allocation4], 4294965248  ;;  %v534_v0 = vld [vmem:[#allocation3 + $0x30] sm:$0xff]  ;;  %v536_v1 = vld [vmem:[#allocation3 + $0x38] sm:$0xff]  ;;  %v495_v25 = vmov 0   ;;  %vm61_vm0 = vcmask 7168  }
   0x7   :  { %v538_v2 = vld [vmem:[#allocation3 + $0x20] sm:$0xff]  ;;  %v54_v3 = vadd.f32 %v536_v1, %v534_v0  ;;  %v542_v4 = vld [vmem:[#allocation3 + $0x28] sm:$0xff]  ;;  %v544_v5 = vld [vmem:[#allocation3 + $0x10] sm:$0xff]  ;;  %416 = vset.pattern.permute.xlu2 %v495_v25  ;;  %417 = vset.pattern.permute.xlu0 %v495_v25  ;;  %vm91_vm1 = vcmask 15368   ;;  %vm107_vm2 = vcmask 261120   ;;  %vm160_vm3 = vcmask 64512  }
   0x8   :  { %v546_v6 = vld [vmem:[#allocation3 + $0x18] sm:$0xff]  ;;  %v51_v7 = vadd.f32 %v542_v4, %v538_v2  ;;  %v552_v9 = vld [vmem:[#allocation3 + $0x70] sm:$0xff]  ;;  %v556_v11 = vld [vmem:[#allocation3 + $0x60] sm:$0xff]  ;;  %418 = vset.pattern.permute.xlu1 %v495_v25  ;;  %vm278_vm6 = vcmask 15360   ;;  %s386_s19 = sshll.u32 %s659_s5, 4  ;;  %s387_s19 = int_to_ptr.hbm [resolvable:$true] %s386_s19 }
   0x9   :  { %v48_v8 = vadd.f32 %v546_v6, %v544_v5  ;;  %55 = vadd.xlane.f32.xlu0 %v54_v3  ;;  %v554_v10 = vld [vmem:[#allocation3 + $0x78] sm:$0xff]  ;;  %v558_v12 = vld [vmem:[#allocation3 + $0x68] sm:$0xff]  ;;  %v560_v13 = vld [vmem:[#allocation3 + $0x50] sm:$0xff] }
   0xa   :  { %52 = vadd.xlane.f32.xlu1 %v51_v7  ;;  %v562_v14 = vld [vmem:[#allocation3 + $0x58] sm:$0xff]  ;;  %v84_v15 = vadd.f32 %v554_v10, %v552_v9  ;;  %v81_v16 = vadd.f32 %v558_v12, %v556_v11  ;;  %v570_v18 = vld [vmem:[#allocation3] sm:$0xff]  ;;  %v572_v19 = vld [vmem:[#allocation3 + $0x8] sm:$0xff] }
   0xb   :  { %49 = vadd.xlane.f32.xlu2 %v48_v8  ;;  %v78_v17 = vadd.f32 %v562_v14, %v560_v13  ;;  %v574_v20 = vld [vmem:[#allocation3 + $0x40] sm:$0xff]  ;;  %v576_v21 = vld [vmem:[#allocation3 + $0x48] sm:$0xff]  ;;  %v45_v22 = vadd.f32 %v572_v19, %v570_v18  ;;  %v138_v32 = vld [vmem:[%s658_s4 + $0x10] sm:$0xff] }
   0xc   :  { %v75_v23 = vadd.f32 %v576_v21, %v574_v20  ;;  %v101_v24 = vld [vmem:[%s656_s2] sm:$0xff]  ;;  %v139_v39 = vld [vmem:[%s658_s4 + $0x18] sm:$0xff]  ;;  %v137_v50 = vld [vmem:[%s658_s4 + $0x8] sm:$0xff] }
   0xd   :  { %v100_v47 = vld [vmem:[%s655_s1] sm:$0xff]  ;;  %v133_v56 = vld [vmem:[%s657_s3 + $0x8] sm:$0xff]  ;;  %v135_v57 = vld [vmem:[%s657_s3 + $0x18] sm:$0xff] }
   0xe   :  { %v136_v49 = vld [vmem:[%s658_s4] sm:$0xff]  ;;  %v134_v58 = vld [vmem:[%s657_s3 + $0x10] sm:$0xff] }
   0xf   :  { %v132_v55 = vld [vmem:[%s657_s3] sm:$0xff]  ;;  %s497_s3 = smov [#allocation6]  }
  0x10   :  { %s384_s16 = sshll.u32 %s497_s3, 4  ;;  %s385_s16 = int_to_ptr.vmem [resolvable:$true] %s384_s16 }
  0x11   :  { %85 = vadd.xlane.f32.xlu0 %v84_v15 }
  0x12   :  { %82 = vadd.xlane.f32.xlu1 %v81_v16 }
  0x13   :  { %79 = vadd.xlane.f32.xlu2 %v78_v17 }
  0x19   :  { %46 = vadd.xlane.f32.xlu0 %v45_v22  ;;  %v496_v22 = vmov 1  }
  0x1a   :  { %76 = vadd.xlane.f32.xlu1 %v75_v23 }
  0x2b   :  { %104 = vperm.xlu2 %416, %v101_v24  }
  0x2d   :  { %142 = vperm.xlu0 %417, %v136_v49  }
  0x33   :  { %152 = vperm.xlu2 %416, %v138_v32   ;;  %147 = vperm.xlu1 %418, %v137_v50  }
  0x3b   :  { %157 = vperm.xlu2 %416, %v139_v39  }
  0x43   :  { %419 = vset.pattern.permute.xlu2 %v496_v22 }
  0x7c   :  { %v56_v26 = vpop.xlane.xlu0 %55 }
  0x7d   :  { %v60_v27 = vmul.f32 0.00390625, %v56_v26  ;;  %v53_v28 = vpop.xlane.xlu1 %52 }
  0x7e   :  { %v50_v29 = vpop.xlane.xlu2 %49  ;;  %v59_v30 = vmul.f32 0.00390625, %v53_v28 }
  0x7f   :  { %v58_v31 = vmul.f32 0.00390625, %v50_v29  ;;  %65 = vst.msk [vmem:[#allocation2 + $0x18] sm:$0xff] %vm61_vm0, %v60_v27 }
  0x80   :  { %64 = vst.msk [vmem:[#allocation2 + $0x10] sm:$0xff] %vm61_vm0, %v59_v30 }
  0x81   :  { %63 = vst.msk [vmem:[#allocation2 + $0x8] sm:$0xff] %vm61_vm0, %v58_v31 }
  0x84   :  { %v86_v33 = vpop.xlane.xlu0 %85 }
  0x85   :  { %v90_v34 = vmul.f32 0.00390625, %v86_v33  ;;  %v83_v35 = vpop.xlane.xlu1 %82 }
  0x86   :  { %v80_v36 = vpop.xlane.xlu2 %79  ;;  %v89_v37 = vmul.f32 0.00390625, %v83_v35 }
  0x87   :  { %v88_v38 = vmul.f32 0.00390625, %v80_v36  ;;  %95 = vst.msk [vmem:[#allocation2 + $0x18] sm:$0xff] %vm91_vm1, %v90_v34 }
  0x88   :  { %94 = vst.msk [vmem:[#allocation2 + $0x10] sm:$0xff] %vm91_vm1, %v89_v37 }
  0x89   :  { %93 = vst.msk [vmem:[#allocation2 + $0x8] sm:$0xff] %vm91_vm1, %v88_v38 }
  0x8c   :  { %v47_v40 = vpop.xlane.xlu0 %46 }
  0x8d   :  { %v57_v41 = vmul.f32 0.00390625, %v47_v40  ;;  %v77_v42 = vpop.xlane.xlu1 %76 }
  0x8e   :  { %v87_v43 = vmul.f32 0.00390625, %v77_v42  ;;  %v99_v44 = vld [vmem:[#allocation2 + $0x18] sm:$0xff]  ;;  %v105_v51 = vpop.permute.xlu2 %104 }
  0x8f   :  { %62 = vst.msk [vmem:[#allocation2] sm:$0xff] %vm61_vm0, %v57_v41  ;;  %123 = vmatpush.msra.mxu0 %v99_v44  ;;  %v98_v45 = vld [vmem:[#allocation2 + $0x10] sm:$0xff] }
  0x90   :  { %92 = vst.msk [vmem:[#allocation2] sm:$0xff] %vm91_vm1, %v87_v43  ;;  %v97_v46 = vld [vmem:[#allocation2 + $0x8] sm:$0xff] }
  0x91   :  { %124 = vmatpush.msra.mxu0 %v98_v45 }
  0x93   :  { %125 = vmatpush.msra.mxu0 %v97_v46 }
  0x96   :  { %v153_v59 = vpop.permute.xlu2 %152 }
  0x97   :  { %v96_v48 = vld [vmem:[#allocation2] sm:$0xff] }
  0x98   :  { %126 = vmatpush.msra.mxu0 %v96_v48 }
  0x99   :  { %399 = vmatmul.msk.f32.vlgmr.msra.gmra.mxu0 %vm107_vm2, %v100_v47 }
  0x9e   :  { %v158_v7 = vpop.permute.xlu2 %157 }
  0x9f   :  { %v143_v60 = vpop.permute.xlu0 %142 }
  0xa5   :  { %v148_v3 = vpop.permute.xlu1 %147 }
 0x116   :  { %v128_v52 = vpop.f32.mrf.mxu0 }
 0x117   :  { %v129_v53 = vadd.f32 %v128_v52, %v105_v51 }
 0x119   :  { %v131_v54 = vmax.f32 %v129_v53, 0.0 }
 0x11b   :  { %188 = vmatpush.msra.mxu1 %v131_v54  ;;  %408 = vmatpush.msra.mxu2 %v131_v54 }
 0x11c   :  { %409 = vmatpush.msra.mxu3 %v131_v54  ;;  %400 = vmatmul.msk.f32.vlgmr.msra.gmra.mxu1 %vm160_vm3, %v132_v55 }
 0x11d   :  { %401 = vmatmul.msk.f32.vlgmr.msra.gmra.mxu2 %vm160_vm3, %v133_v56  ;;  %403 = vmatmul.msk.f32.vlgmr.msra.gmra.mxu3 %vm160_vm3, %v135_v57 }
 0x125   :  { %402 = vmatmul.msk.f32.gmra.mxu2 %vm160_vm3, %v134_v58 }
 0x199   :  { %v190_v61 = vpop.f32.mrf.mxu1 }
 0x19a   :  { %v191_v62 = vadd.f32 %v190_v61, %v143_v60 }
 0x19c   :  { %v404_v63 = vmul.f32 -1.442695, %v191_v62 }
 0x19e   :  { %424 = vpow2.f32 %v404_v63 }
 0x1a0   :  { %v193_v8 = vpop.f32.mrf.mxu2  ;;  %v199_v15 = vpop.f32.mrf.mxu3 }
 0x1a1   :  { %v194_v16 = vadd.f32 %v193_v8, %v148_v3  ;;  %v200_v17 = vadd.f32 %v199_v15, %v158_v7 }
 0x1a3   :  { %v405_v23 = vmul.f32 -1.442695, %v194_v16  ;;  %v407_v24 = vmul.f32 -1.442695, %v200_v17 }
 0x1a4   :  { %v425_v26 = vpop.eup %424 }
 0x1a5   :  { %v214_v27 = vadd.f32 1.0, %v425_v26  ;;  %426 = vpow2.f32 %v405_v23 }
 0x1a6   :  { %428 = vpow2.f32 %v407_v24 }
 0x1a7   :  { %430 = vrcp.f32 %v214_v27  ;;  %v229_v38 = vand.u32 2147483648, %v214_v27  ;;  %vm223_vm4 = vweird.f32 %v214_v27  ;;  %v227_v40 = vand.u32 2147483647, %v214_v27 }
 0x1a8   :  { %v196_v28 = vpop.f32.mrf.mxu2 }
 0x1a9   :  { %v197_v29 = vadd.f32 %v196_v28, %v153_v59  ;;  %v230_v46 = vor.u32 1.1754944e-38, %v229_v38  ;;  %vm228_vm8 = vcmp.eq.f32.partialorder %v227_v40, 8.507059e+37 }
 0x1ab   :  { %v427_v30 = vpop.eup %426  ;;  %v406_v31 = vmul.f32 -1.442695, %v197_v29 }
 0x1ac   :  { %v429_v32 = vpop.eup %428  ;;  %v215_v33 = vadd.f32 1.0, %v427_v30 }
 0x1ad   :  { %v431_v34 = vpop.eup %430  ;;  %v217_v35 = vadd.f32 1.0, %v429_v32  ;;  %432 = vpow2.f32 %v406_v31 }
 0x1ae   :  { %v219_v36 = vmul.f32 %v431_v34, %v214_v27  ;;  %434 = vrcp.f32 %v215_v33  ;;  %vm224_vm5 = vweird.f32 %v431_v34  ;;  %v244_v52 = vand.u32 2147483648, %v215_v33 }
 0x1af   :  { %436 = vrcp.f32 %v217_v35  ;;  %vm225_vm7 = vmor %vm223_vm4, %vm224_vm5  ;;  %v242_v55 = vand.u32 2147483647, %v215_v33  ;;  %v274_v56 = vand.u32 2147483648, %v217_v35  ;;  %v272_v58 = vand.u32 2147483647, %v217_v35 }
 0x1b0   :  { %v220_v37 = vsub.f32 1.0, %v219_v36  ;;  %vm238_vm11 = vweird.f32 %v215_v33  ;;  %v245_v61 = vor.u32 1.1754944e-38, %v244_v52  ;;  %vm268_vm13 = vweird.f32 %v217_v35 }
 0x1b1   :  { %vm243_vm14 = vcmp.eq.f32.partialorder %v242_v55, 8.507059e+37  ;;  %v275_v3 = vor.u32 1.1754944e-38, %v274_v56  ;;  %vm273_vm0 = vcmp.eq.f32.partialorder %v272_v58, 8.507059e+37 }
 0x1b2   :  { %v221_v39 = vmul.f32 %v431_v34, %v220_v37 }
 0x1b3   :  { %v433_v41 = vpop.eup %432 }
 0x1b4   :  { %v435_v42 = vpop.eup %434  ;;  %v222_v43 = vadd.f32 %v431_v34, %v221_v39  ;;  %v216_v44 = vadd.f32 1.0, %v433_v41 }
 0x1b5   :  { %v437_v45 = vpop.eup %436  ;;  %v234_v47 = vmul.f32 %v435_v42, %v215_v33  ;;  %vm239_vm9 = vweird.f32 %v435_v42 }
 0x1b6   :  { %v226_v48 = vsel %vm225_vm7, %v431_v34, %v222_v43  ;;  %v264_v49 = vmul.f32 %v437_v45, %v217_v35  ;;  %438 = vrcp.f32 %v216_v44  ;;  %vm269_vm10 = vweird.f32 %v437_v45  ;;  %vm240_vm12 = vmor %vm238_vm11, %vm239_vm9 }
 0x1b7   :  { %v231_v50 = vsel %vm228_vm8, %v230_v46, %v226_v48  ;;  %v235_v51 = vsub.f32 1.0, %v234_v47  ;;  %vm270_vm15 = vmor %vm268_vm13, %vm269_vm10  ;;  %v259_v24 = vand.u32 2147483648, %v216_v44  ;;  %v257_v27 = vand.u32 2147483647, %v216_v44 }
 0x1b8   :  { %279 = vst.msk [vmem:[#allocation2] sm:$0xff] %vm278_vm6, %v231_v50  ;;  %v265_v53 = vsub.f32 1.0, %v264_v49  ;;  %vm253_vm2 = vweird.f32 %v216_v44 }
 0x1b9   :  { %v236_v54 = vmul.f32 %v435_v42, %v235_v51  ;;  %v260_v29 = vor.u32 1.1754944e-38, %v259_v24  ;;  %vm258_vm4 = vcmp.eq.f32.partialorder %v257_v27, 8.507059e+37 }
 0x1ba   :  { %v266_v57 = vmul.f32 %v437_v45, %v265_v53 }
 0x1bb   :  { %v237_v59 = vadd.f32 %v435_v42, %v236_v54 }
 0x1bc   :  { %v439_v60 = vpop.eup %438  ;;  %v267_v62 = vadd.f32 %v437_v45, %v266_v57 }
 0x1bd   :  { %v241_v63 = vsel %vm240_vm12, %v435_v42, %v237_v59  ;;  %v249_v7 = vmul.f32 %v439_v60, %v216_v44  ;;  %vm254_vm1 = vweird.f32 %v439_v60 }
 0x1be   :  { %v246_v8 = vsel %vm243_vm14, %v245_v61, %v241_v63  ;;  %v271_v15 = vsel %vm270_vm15, %v437_v45, %v267_v62  ;;  %vm255_vm3 = vmor %vm253_vm2, %vm254_vm1 }
 0x1bf   :  { %280 = vst.msk [vmem:[#allocation2 + $0x8] sm:$0xff] %vm278_vm6, %v246_v8  ;;  %v276_v16 = vsel %vm273_vm0, %v275_v3, %v271_v15  ;;  %v250_v17 = vsub.f32 1.0, %v249_v7  ;;  %v339_v23 = vld [vmem:[#allocation2] sm:$0xff] }
 0x1c0   :  { %282 = vst.msk [vmem:[#allocation2 + $0x18] sm:$0xff] %vm278_vm6, %v276_v16  ;;  %345 = vperm.xlu2 %419, %v339_v23   ;;  %297 = vperm.xlu1 %418, %v339_v23  }
 0x1c1   :  { %v251_v26 = vmul.f32 %v439_v60, %v250_v17 }
 0x1c3   :  { %v252_v28 = vadd.f32 %v439_v60, %v251_v26 }
 0x1c5   :  { %v256_v30 = vsel %vm255_vm3, %v439_v60, %v252_v28 }
 0x1c6   :  { %v261_v31 = vsel %vm258_vm4, %v260_v29, %v256_v30  ;;  %v292_v33 = vld [vmem:[#allocation2 + $0x8] sm:$0xff] }
 0x1c7   :  { %281 = vst.msk [vmem:[#allocation2 + $0x10] sm:$0xff] %vm278_vm6, %v261_v31  ;;  %v294_v32 = vld [vmem:[#allocation2 + $0x18] sm:$0xff] }
 0x1c8   :  { %312 = vperm.xlu0 %417, %v294_v32   ;;  %420 = vset.pattern.permute.xlu2 %v495_v25 }
 0x1c9   :  { %302 = vperm.xlu2 %420, %v292_v33  }
 0x1ce   :  { %v293_v34 = vld [vmem:[#allocation2 + $0x10] sm:$0xff] }
 0x1cf   :  { %307 = vperm.xlu1 %418, %v293_v34  }
 0x1d0   :  { %422 = vset.pattern.permute.xlu0 %v496_v22 }
 0x1d1   :  { %355 = vperm.xlu0 %422, %v293_v34   ;;  %423 = vset.pattern.permute.xlu2 %v496_v22 }
 0x1d2   :  { %360 = vperm.xlu2 %423, %v294_v32  }
 0x1d7   :  { %421 = vset.pattern.permute.xlu1 %v496_v22 }
 0x1d8   :  { %350 = vperm.xlu1 %421, %v292_v33  }
 0x21a   :  { %v346_v35 = vpop.permute.xlu2 %345 }
 0x21b   :  { %v363_v36 = vmul.f32 %v346_v35, %v574_v20  ;;  %v364_v37 = vmul.f32 %v346_v35, %v576_v21 }
 0x21d   :  { %372 = vst [vmem:[#allocation6 + $0x40] sm:$0xff] %v363_v36 }
 0x21e   :  { %373 = vst [vmem:[#allocation6 + $0x48] sm:$0xff] %v364_v37 }
 0x223   :  { %v303_v25 = vpop.permute.xlu2 %302 }
 0x224   :  { %v317_v38 = vmul.f32 %v303_v25, %v544_v5  ;;  %v318_v39 = vmul.f32 %v303_v25, %v546_v6 }
 0x226   :  { %325 = vst [vmem:[#allocation6 + $0x10] sm:$0xff] %v317_v38 }
 0x227   :  { %326 = vst [vmem:[#allocation6 + $0x18] sm:$0xff] %v318_v39 }
 0x22c   :  { %v361_v40 = vpop.permute.xlu2 %360 }
 0x22d   :  { %v369_v41 = vmul.f32 %v361_v40, %v552_v9  ;;  %v370_v22 = vmul.f32 %v361_v40, %v554_v10 }
 0x22f   :  { %378 = vst [vmem:[#allocation6 + $0x70] sm:$0xff] %v369_v41 }
 0x230   :  { %379 = vst [vmem:[#allocation6 + $0x78] sm:$0xff] %v370_v22 }
 0x232   :  { %v298_v42 = vpop.permute.xlu1 %297 }
 0x233   :  { %v315_v20 = vmul.f32 %v298_v42, %v570_v18  ;;  %v316_v21 = vmul.f32 %v298_v42, %v572_v19 }
 0x235   :  { %323 = vst [vmem:[#allocation6] sm:$0xff] %v315_v20 }
 0x236   :  { %324 = vst [vmem:[#allocation6 + $0x8] sm:$0xff] %v316_v21 }
 0x23a   :  { %v313_v43 = vpop.permute.xlu0 %312 }
 0x23b   :  { %v321_v5 = vmul.f32 %v313_v43, %v534_v0  ;;  %v322_v6 = vmul.f32 %v313_v43, %v536_v1 }
 0x23d   :  { %329 = vst [vmem:[#allocation6 + $0x30] sm:$0xff] %v321_v5 }
 0x23e   :  { %330 = vst [vmem:[#allocation6 + $0x38] sm:$0xff] %v322_v6 }
 0x241   :  { %v308_v44 = vpop.permute.xlu1 %307 }
 0x242   :  { %v319_v9 = vmul.f32 %v308_v44, %v538_v2  ;;  %v320_v10 = vmul.f32 %v308_v44, %v542_v4 }
 0x243   :  { %v356_v45 = vpop.permute.xlu0 %355 }
 0x244   :  { %327 = vst [vmem:[#allocation6 + $0x20] sm:$0xff] %v319_v9  ;;  %v367_v18 = vmul.f32 %v356_v45, %v556_v11  ;;  %v368_v19 = vmul.f32 %v356_v45, %v558_v12 }
 0x245   :  { %328 = vst [vmem:[#allocation6 + $0x28] sm:$0xff] %v320_v10 }
 0x246   :  { %376 = vst [vmem:[#allocation6 + $0x60] sm:$0xff] %v367_v18 }
 0x247   :  { %377 = vst [vmem:[#allocation6 + $0x68] sm:$0xff] %v368_v19 }
 0x24a   :  { %v351_v0 = vpop.permute.xlu1 %350 }
 0x24b   :  { %v365_v1 = vmul.f32 %v351_v0, %v560_v13  ;;  %v366_v2 = vmul.f32 %v351_v0, %v562_v14 }
 0x24d   :  { %374 = vst [vmem:[#allocation6 + $0x50] sm:$0xff] %v365_v1 }
 0x24e   :  { %375 = vst [vmem:[#allocation6 + $0x58] sm:$0xff] %v366_v2 }
 0x24f   :  { %392 = dma.vmem_to_hbm [thread:$0]  %s385_s16, 2048, %s387_s19, [#allocation5], %s493_s23, %s493_s23, %s494_s24  }
 0x250   :  { %490 = dma.done.wait [#allocation5], 2048  }
 0x251   :  { %491 = vsyncadd [#allocation5], 4294965248 }
 0x252   :  { %397 = vsyncpa [#allocation4], 1 }
 0x253   :  { %398 = vsyncpa [#allocation5], 1 }

</bundles_post_ra>
